<compile_context>
chip_gen: v7x
topology: tpu7x:2x2x1
jax: 0.10.0
libtpu: 0.0.40
codegen_flags: <defaults>
</compile_context>

<pallas_src>
import jax
import jax.numpy as jnp
from jax.experimental import pallas as pl
from jax.experimental.pallas import tpu as pltpu

HIDDEN = 160                      # fixed by the module definition
_LANE = 128                       # TPU lane width
_SUBLANE = 8                      # f32 sublane count
_VMEM_LIMIT_BYTES = 32 * 1024 * 1024  # safe on v5e/v6e/v7x; far above actual use


def _round_up(x, m):
    return (x + m - 1) // m * m


def server_nn_kernel(x_ref, w1_ref, b1_ref, w2_ref, b2_ref, o_ref):
    # layer1: x @ W1 + b1, ReLU   (MXU matmul, f32 accumulation)
    h = jnp.dot(x_ref[...], w1_ref[...], preferred_element_type=jnp.float32)
    h = jnp.maximum(h + b1_ref[...], 0.0)          # (1, H_PAD) broadcasts over TB
    # layer2: h @ W2 + b2, ReLU
    y = jnp.dot(h.astype(w2_ref.dtype), w2_ref[...],
                preferred_element_type=jnp.float32)
    y = jnp.maximum(y + b2_ref[...], 0.0)
    o_ref[...] = y.astype(o_ref.dtype)


def server_nn_forward(x, w1, b1, w2, b2, *, block_b=1024,
                      param_dtype=jnp.float32):
    """x: (B, D_in); w1: (D_in, 160); b1: (160,); w2: (160, D_out); b2: (D_out,).

    Returns (B, D_out) f32, identical to ReLU(ReLU(x@W1+b1)@W2+b2).
    """
    B, d_in = x.shape
    hidden = w1.shape[1]
    d_out = w2.shape[1]

    # ---- lane-dense zero padding of parameters (exact under ReLU) ----------
    h_pad = _round_up(hidden, _LANE)   # 160 -> 256
    o_pad = _round_up(d_out, _LANE)    # e.g. 16 -> 128

    w1_p = jnp.zeros((d_in, h_pad), param_dtype).at[:, :hidden].set(
        w1.astype(param_dtype))
    b1_p = jnp.zeros((1, h_pad), jnp.float32).at[:, :hidden].set(b1)
    w2_p = jnp.zeros((h_pad, o_pad), param_dtype).at[:hidden, :d_out].set(
        w2.astype(param_dtype))
    b2_p = jnp.zeros((1, o_pad), jnp.float32).at[:, :d_out].set(b2)

    # ---- batch tiling: TB multiple of 8, batch padded to a multiple of TB --
    tb = _round_up(min(block_b, _round_up(B, _SUBLANE)), _SUBLANE)
    b_pad = _round_up(B, tb)
    x_p = x.astype(param_dtype)
    if b_pad != B:
        x_p = jnp.pad(x_p, ((0, b_pad - B), (0, 0)))

    grid = (b_pad // tb,)

    out = pl.pallas_call(
        server_nn_kernel,
        out_shape=jax.ShapeDtypeStruct((b_pad, o_pad), jnp.float32),
        grid_spec=pltpu.PrefetchScalarGridSpec(
            num_scalar_prefetch=0,
            grid=grid,
            in_specs=[
                # activations move with the batch-tile grid index
                pl.BlockSpec((tb, d_in), lambda i: (i, 0)),
                # weights / biases: constant index_map -> VMEM-resident
                pl.BlockSpec((d_in, h_pad), lambda i: (0, 0)),
                pl.BlockSpec((1, h_pad), lambda i: (0, 0)),
                pl.BlockSpec((h_pad, o_pad), lambda i: (0, 0)),
                pl.BlockSpec((1, o_pad), lambda i: (0, 0)),
            ],
            out_specs=pl.BlockSpec((tb, o_pad), lambda i: (i, 0)),
        ),
        compiler_params=pltpu.CompilerParams(
            dimension_semantics=("parallel",),          # shards across TCs on v7x
            vmem_limit_bytes=_VMEM_LIMIT_BYTES,
        ),
    )(x_p, w1_p, b1_p, w2_p, b2_p)

    # slice off batch / lane padding
    return out[:B, :d_out]


def init_params(key, input_size, output_size):
    """Deterministic synthetic parameters (shapes match nn.Linear init)."""
    k1, k2, k3, k4 = jax.random.split(key, 4)
    # PyTorch nn.Linear: weight (out, in), bias (out,), uniform(-1/sqrt(in), 1/sqrt(in)).
    lim1 = 1.0 / jnp.sqrt(jnp.float32(input_size))
    lim2 = 1.0 / jnp.sqrt(jnp.float32(HIDDEN))
    w1_t = jax.random.uniform(k1, (HIDDEN, input_size), jnp.float32, -lim1, lim1)
    b1 = jax.random.uniform(k2, (HIDDEN,), jnp.float32, -lim1, lim1)
    w2_t = jax.random.uniform(k3, (output_size, HIDDEN), jnp.float32, -lim2, lim2)
    b2 = jax.random.uniform(k4, (output_size,), jnp.float32, -lim2, lim2)
    # transpose to (in, out) for the kernel's x @ W convention
    return w1_t.T, b1, w2_t.T, b2


if __name__ == "__main__":
    batch = 8
    input_size = 32
    output_size = 16

    key = jax.random.PRNGKey(0)
    kx, kp = jax.random.split(key)
    x = jax.random.normal(kx, (batch, input_size), jnp.float32)
    w1, b1, w2, b2 = init_params(kp, input_size, output_size)

    out = server_nn_forward(x, w1, b1, w2, b2)
    out = jax.block_until_ready(out)

    # pure-JAX reference check
    ref = jnp.maximum(jnp.maximum(x @ w1 + b1, 0.0) @ w2 + b2, 0.0)
    assert out.shape == (batch, output_size)
    assert jnp.allclose(out, ref, atol=1e-5, rtol=1e-5)

    # also exercise a batch that is not a multiple of the tile / sublane count
    x2 = jax.random.normal(kx, (13, input_size), jnp.float32)
    out2 = jax.block_until_ready(server_nn_forward(x2, w1, b1, w2, b2))
    ref2 = jnp.maximum(jnp.maximum(x2 @ w1 + b1, 0.0) @ w2 + b2, 0.0)
    assert out2.shape == (13, output_size)
    assert jnp.allclose(out2, ref2, atol=1e-5, rtol=1e-5)

    print("KERNEL_OK")
</pallas_src>

<mosaic_0001>
module attributes {stable_mosaic.version = 11 : i64} {
  func.func @server_nn_kernel(%arg0: i32, %arg1: memref<8x32xf32, #tpu.memory_space<vmem>>, %arg2: memref<32x256xf32, #tpu.memory_space<vmem>>, %arg3: memref<1x256xf32, #tpu.memory_space<vmem>>, %arg4: memref<256x128xf32, #tpu.memory_space<vmem>>, %arg5: memref<1x128xf32, #tpu.memory_space<vmem>>, %arg6: memref<8x128xf32, #tpu.memory_space<vmem>>) attributes {dimension_semantics = [#tpu.dimension_semantics<parallel>], iteration_bounds = array<i64: 1>, scalar_prefetch = 0 : i64, scratch_operands = 0 : i64, tpu.core_type = #tpu.core_type<tc>, window_params = [{transform_indices = @transform_0, window_bounds = array<i64: 8, 32>}, {pipeline_mode = #tpu.pipeline_mode<synchronous>, transform_indices = @transform_1, window_bounds = array<i64: 32, 256>}, {pipeline_mode = #tpu.pipeline_mode<synchronous>, transform_indices = @transform_2, window_bounds = array<i64: 1, 256>}, {pipeline_mode = #tpu.pipeline_mode<synchronous>, transform_indices = @transform_3, window_bounds = array<i64: 256, 128>}, {pipeline_mode = #tpu.pipeline_mode<synchronous>, transform_indices = @transform_4, window_bounds = array<i64: 1, 128>}, {transform_indices = @transform_5, window_bounds = array<i64: 8, 128>}]} {
    %c0 = arith.constant 0 : index
    %c0_0 = arith.constant 0 : index
    %0 = vector.load %arg1[%c0, %c0_0] : memref<8x32xf32, #tpu.memory_space<vmem>>, vector<8x32xf32>
    %c0_1 = arith.constant 0 : index
    %c0_2 = arith.constant 0 : index
    %1 = vector.load %arg2[%c0_1, %c0_2] : memref<32x256xf32, #tpu.memory_space<vmem>>, vector<32x256xf32>
    %cst = arith.constant dense<0.000000e+00> : vector<8x256xf32>
    %2 = tpu.matmul %0, %1, %cst {dimension_numbers = #tpu.dot_dimension_numbers<[1], [0], [0], [1], [0, 0, 1, 1], [], []>} : vector<8x32xf32>, vector<32x256xf32>, vector<8x256xf32> -> vector<8x256xf32>
    %c0_3 = arith.constant 0 : index
    %c0_4 = arith.constant 0 : index
    %3 = vector.load %arg3[%c0_3, %c0_4] : memref<1x256xf32, #tpu.memory_space<vmem>>, vector<1x256xf32>
    %4 = vector.broadcast %3 : vector<1x256xf32> to vector<8x256xf32>
    %5 = arith.addf %2, %4 : vector<8x256xf32>
    %cst_5 = arith.constant 0.000000e+00 : f32
    %6 = vector.broadcast %cst_5 : f32 to vector<8x256xf32>
    %7 = arith.maximumf %5, %6 : vector<8x256xf32>
    %c0_6 = arith.constant 0 : index
    %c0_7 = arith.constant 0 : index
    %8 = vector.load %arg4[%c0_6, %c0_7] : memref<256x128xf32, #tpu.memory_space<vmem>>, vector<256x128xf32>
    %cst_8 = arith.constant dense<0.000000e+00> : vector<8x128xf32>
    %9 = tpu.matmul %7, %8, %cst_8 {dimension_numbers = #tpu.dot_dimension_numbers<[1], [0], [0], [1], [0, 0, 1, 1], [], []>} : vector<8x256xf32>, vector<256x128xf32>, vector<8x128xf32> -> vector<8x128xf32>
    %c0_9 = arith.constant 0 : index
    %c0_10 = arith.constant 0 : index
    %10 = vector.load %arg5[%c0_9, %c0_10] : memref<1x128xf32, #tpu.memory_space<vmem>>, vector<1x128xf32>
    %11 = vector.broadcast %10 : vector<1x128xf32> to vector<8x128xf32>
    %12 = arith.addf %9, %11 : vector<8x128xf32>
    %cst_11 = arith.constant 0.000000e+00 : f32
    %13 = vector.broadcast %cst_11 : f32 to vector<8x128xf32>
    %14 = arith.maximumf %12, %13 : vector<8x128xf32>
    %c0_12 = arith.constant 0 : index
    %c0_13 = arith.constant 0 : index
    %15 = vector.load %arg6[%c0_12, %c0_13] : memref<8x128xf32, #tpu.memory_space<vmem>>, vector<8x128xf32>
    tpu.vector_store %arg6[%c0_12, %c0_13], %14 {strides = array<i32>} : memref<8x128xf32, #tpu.memory_space<vmem>>, vector<8x128xf32>,
    return
  }
  func.func @transform_0(%arg0: i32) -> (i32, i32) {
    %c0_i32 = arith.constant 0 : i32
    %c0_i32_0 = arith.constant 0 : i32
    return %arg0, %c0_i32 : i32, i32
  }
  func.func @transform_1(%arg0: i32) -> (i32, i32) {
    %c0_i32 = arith.constant 0 : i32
    %c0_i32_0 = arith.constant 0 : i32
    %c0_i32_1 = arith.constant 0 : i32
    return %c0_i32, %c0_i32_0 : i32, i32
  }
  func.func @transform_2(%arg0: i32) -> (i32, i32) {
    %c0_i32 = arith.constant 0 : i32
    %c0_i32_0 = arith.constant 0 : i32
    %c0_i32_1 = arith.constant 0 : i32
    return %c0_i32, %c0_i32_0 : i32, i32
  }
  func.func @transform_3(%arg0: i32) -> (i32, i32) {
    %c0_i32 = arith.constant 0 : i32
    %c0_i32_0 = arith.constant 0 : i32
    %c0_i32_1 = arith.constant 0 : i32
    return %c0_i32, %c0_i32_0 : i32, i32
  }
  func.func @transform_4(%arg0: i32) -> (i32, i32) {
    %c0_i32 = arith.constant 0 : i32
    %c0_i32_0 = arith.constant 0 : i32
    %c0_i32_1 = arith.constant 0 : i32
    return %c0_i32, %c0_i32_0 : i32, i32
  }
  func.func @transform_5(%arg0: i32) -> (i32, i32) {
    %c0_i32 = arith.constant 0 : i32
    %c0_i32_0 = arith.constant 0 : i32
    return %arg0, %c0_i32 : i32, i32
  }
}

</mosaic_0001>

<bundles_post_ra>
// kernel: tpu_custom_call.1
= control target key start
LH: loop header
LB: loop body
LE: loop exit
PB: predicated region body
PF: predicated region fallthrough
CT: control target
= control target key end

     0   :  { %10 = vsyncpa [#allocation3], 0  ;;  %s558_s0 = inlined_call_operand.hbm [shape: f32[8,32], index: 0, kind: input, shape index: {}]   ;;  %s559_s1 = inlined_call_operand.hbm [shape: f32[32,256], index: 1, kind: input, shape index: {}]   ;;  %s560_s2 = inlined_call_operand.vmem [shape: f32[1,256], index: 2, kind: input, shape index: {}]   ;;  %s561_s3 = inlined_call_operand.hbm [shape: f32[256,128], index: 3, kind: input, shape index: {}]   ;;  %s562_s4 = inlined_call_operand.vmem [shape: f32[1,128], index: 4, kind: input, shape index: {}]   ;;  %s563_s5 = inlined_call_operand.hbm [shape: f32[8,128], index: 5, kind: output, shape index: {}]  }
   0x1   :  { %11 = vsyncpa [#allocation6], 0 }
   0x2   :  { %12 = vsyncpa [#allocation4], 0  ;;  %s465_s18 = smov [#allocation5]   ;;  %s371_s22 = scalar_lea.hbm %s559_s1, 1024 }
   0x3   :  { %s28_s19 = sshll.u32 %s465_s18, 4  ;;  %p372_p0 = scmp.ne.s32.totalorder %s559_s1, %s371_s22  ;;  %s29_s19 = int_to_ptr.vmem [resolvable:$true] %s28_s19 }
   0x4   :  { %p375_p1 = scmp.lt.u32.totalorder %s371_s22, %s559_s1 }
   0x6   :  { %p377_p2 = pnand %p375_p1, %p372_p0 }
   0x8   :  { %380 = shalt.err (!%p377_p2)
}
   0x9   :  { %s381_s27 = scalar_lea.vmem %s29_s19, 1024  ;;  %p386_p4 = scmp.lt.s32.totalorder %s29_s19, %s29_s19 }
   0xa   :  { %p382_p3 = scmp.ne.s32.totalorder %s29_s19, %s381_s27  ;;  %p387_p5 = scmp.lt.s32.totalorder %s381_s27, %s381_s27 }
   0xc   :  { %p388_p6 = por %p387_p5, %p386_p4 }
   0xe   :  { %p389_p7 = pnand %p388_p6, %p382_p3 }
  0x10   :  { %392 = shalt.err (!%p389_p7)
}
  0x11   :  { %s466_s28 = smov 256   ;;  %s467_s29 = smov 16  }
  0x12   :  { %34 = dma.hbm_to_vmem [thread:$0]  %s559_s1, 1024, %s29_s19, [#allocation6], %s466_s28, %s466_s28, %s467_s29  }
  0x13   :  { %s468_s7 = smov [#allocation2]   ;;  %s469_s9 = smov [#allocation7]  }
  0x14   :  { %s19_s8 = sshll.u32 %s468_s7, 4  ;;  %s42_s10 = sshll.u32 %s469_s9, 4  ;;  %s20_s8 = int_to_ptr.vmem [resolvable:$true] %s19_s8  ;;  %s43_s10 = int_to_ptr.vmem [resolvable:$true] %s42_s10 }
  0x15   :  { %s393_s13 = scalar_lea.hbm %s558_s0, 128 }
  0x16   :  { %p394_p8 = scmp.ne.s32.totalorder %s558_s0, %s393_s13  ;;  %p397_p9 = scmp.lt.u32.totalorder %s393_s13, %s558_s0 }
  0x18   :  { %p399_p10 = pnand %p397_p9, %p394_p8 }
  0x1a   :  { %402 = shalt.err (!%p399_p10)
}
  0x1b   :  { %s403_s1 = scalar_lea.vmem %s20_s8, 128  ;;  %p408_p12 = scmp.lt.s32.totalorder %s20_s8, %s20_s8 }
  0x1c   :  { %p404_p11 = scmp.ne.s32.totalorder %s20_s8, %s403_s1  ;;  %p409_p13 = scmp.lt.s32.totalorder %s403_s1, %s403_s1 }
  0x1e   :  { %p410_p0 = por %p409_p13, %p408_p12 }
  0x20   :  { %p411_p1 = pnand %p410_p0, %p404_p11 }
  0x22   :  { %414 = shalt.err (!%p411_p1)
}
  0x23   :  { %22 = dma.hbm_to_vmem [thread:$0]  %s558_s0, 128, %s20_s8, [#allocation3]  }
  0x24   :  { %s415_s22 = scalar_lea.hbm %s561_s3, 4096 }
  0x25   :  { %p416_p2 = scmp.ne.s32.totalorder %s561_s3, %s415_s22  ;;  %p419_p3 = scmp.lt.u32.totalorder %s415_s22, %s561_s3 }
  0x27   :  { %p421_p4 = pnand %p419_p3, %p416_p2 }
  0x29   :  { %424 = shalt.err (!%p421_p4)
}
  0x2a   :  { %s425_s27 = scalar_lea.vmem %s43_s10, 4096  ;;  %p430_p6 = scmp.lt.s32.totalorder %s43_s10, %s43_s10 }
  0x2b   :  { %p426_p5 = scmp.ne.s32.totalorder %s43_s10, %s425_s27  ;;  %p431_p7 = scmp.lt.s32.totalorder %s425_s27, %s425_s27 }
  0x2d   :  { %p432_p8 = por %p431_p7, %p430_p6 }
  0x2f   :  { %p433_p9 = pnand %p432_p8, %p426_p5 }
  0x31   :  { %436 = shalt.err (!%p433_p9)
}
  0x32   :  { %s470_s0 = smov 128   ;;  %s471_s28 = smov 8  }
  0x33   :  { %48 = dma.hbm_to_vmem [thread:$0]  %s561_s3, 4096, %s43_s10, [#allocation6], %s470_s0, %s470_s0, %s471_s28  }
  0x34   :  { %459 = dma.done.wait [#allocation3], 128  }
  0x35   :  { %460 = vsyncadd [#allocation3], 4294967168 }
  0x36   :  { %461 = dma.done.wait [#allocation6], 5120  }
  0x37   :  { %462 = vsyncadd [#allocation6], 4294962176  ;;  %v472_v0 = vmov 0.0   ;;  %v62_v1 = vld [vmem:[#allocation5 + $0x8] sm:$0xff]  ;;  %v64_v2 = vld [vmem:[#allocation5 + $0x18] sm:$0xff]  ;;  %vm81_vm0 = vcmask 261120   ;;  %v71_v62 = vlaneseq }
  0x38   :  { %149 = vmatprep.mubr.f32.mxu0 %v472_v0  ;;  %v61_v3 = vld [vmem:[#allocation5] sm:$0xff]  ;;  %v322_v4 = vpack.c.bf16 %v64_v2, %v62_v1  ;;  %v63_v5 = vld [vmem:[#allocation5 + $0x10] sm:$0xff]  ;;  %v66_v6 = vld [vmem:[#allocation5 + $0x28] sm:$0xff]  ;;  %s473_s9 = smov [#allocation8]  }
  0x39   :  { %v68_v7 = vld [vmem:[#allocation5 + $0x38] sm:$0xff]  ;;  %v324_v8 = vpack.c.bf16 %v63_v5, %v61_v3  ;;  %v65_v10 = vld [vmem:[#allocation5 + $0x20] sm:$0xff]  ;;  %v67_v11 = vld [vmem:[#allocation5 + $0x30] sm:$0xff]  ;;  %v72_v63 = vshrl.u32 %v71_v62, 7 }
  0x3a   :  { %v326_v9 = vpack.c.bf16 %v68_v7, %v66_v6  ;;  %323 = vmatprep.subr.bf16.mxu0 %v322_v4  ;;  %v174_v12 = vld [vmem:[#allocation7 + $0x80] sm:$0xff]  ;;  %v175_v13 = vld [vmem:[#allocation7 + $0x88] sm:$0xff]  ;;  %v328_v15 = vpack.c.bf16 %v67_v11, %v65_v10  ;;  %v176_v18 = vld [vmem:[#allocation7 + $0x90] sm:$0xff] }
  0x3b   :  { %v158_v14 = vld [vmem:[#allocation7] sm:$0xff]  ;;  %325 = vmatpush1.bf16.msra.mxu0 %v324_v8  ;;  %v330_v16 = vpack.c.bf16 %v175_v13, %v174_v12  ;;  %v159_v17 = vld [vmem:[#allocation7 + $0x8] sm:$0xff]  ;;  %v177_v19 = vld [vmem:[#allocation7 + $0x98] sm:$0xff]  ;;  %v73_v0 = vsub.s32 0, %v72_v63  ;;  %v77_v2 = vsub.s32 1, %v72_v63 }
  0x3c   :  { %327 = vmatprep.subr.bf16.mxu0 %v326_v9  ;;  %v332_v20 = vpack.c.bf16 %v159_v17, %v158_v14  ;;  %v334_v21 = vpack.c.bf16 %v177_v19, %v176_v18  ;;  %v160_v22 = vld [vmem:[#allocation7 + $0x10] sm:$0xff]  ;;  %v161_v23 = vld [vmem:[#allocation7 + $0x18] sm:$0xff]  ;;  %v178_v24 = vld [vmem:[#allocation7 + $0xa0] sm:$0xff] }
  0x3d   :  { %331 = vmatprep.subr.bf16.mxu1 %v330_v16  ;;  %v179_v25 = vld [vmem:[#allocation7 + $0xa8] sm:$0xff]  ;;  %v336_v26 = vpack.c.bf16 %v161_v23, %v160_v22  ;;  %v60_v27 = vld [vmem:[#allocation2] sm:$0xff]  ;;  %v162_v29 = vld [vmem:[#allocation7 + $0x20] sm:$0xff] }
  0x3e   :  { %333 = vmatpush3.bf16.msra.mxu1 %v332_v20  ;;  %v338_v28 = vpack.c.bf16 %v179_v25, %v178_v24  ;;  %v163_v30 = vld [vmem:[#allocation7 + $0x28] sm:$0xff]  ;;  %v180_v31 = vld [vmem:[#allocation7 + $0xb0] sm:$0xff]  ;;  %v181_v32 = vld [vmem:[#allocation7 + $0xb8] sm:$0xff] }
  0x3f   :  { %329 = vmatpush1.bf16.msra.mxu0 %v328_v15  ;;  %335 = vmatprep.subr.bf16.mxu1 %v334_v21  ;;  %v340_v33 = vpack.c.bf16 %v163_v30, %v162_v29  ;;  %v342_v34 = vpack.c.bf16 %v181_v32, %v180_v31  ;;  %v164_v35 = vld [vmem:[#allocation7 + $0x30] sm:$0xff]  ;;  %v165_v36 = vld [vmem:[#allocation7 + $0x38] sm:$0xff]  ;;  %v182_v37 = vld [vmem:[#allocation7 + $0xc0] sm:$0xff] }
  0x40   :  { %v183_v38 = vld [vmem:[#allocation7 + $0xc8] sm:$0xff]  ;;  %v344_v39 = vpack.c.bf16 %v165_v36, %v164_v35  ;;  %v166_v41 = vld [vmem:[#allocation7 + $0x40] sm:$0xff]  ;;  %v184_v43 = vld [vmem:[#allocation7 + $0xd0] sm:$0xff] }
  0x41   :  { %v346_v40 = vpack.c.bf16 %v183_v38, %v182_v37  ;;  %v167_v42 = vld [vmem:[#allocation7 + $0x48] sm:$0xff]  ;;  %v185_v44 = vld [vmem:[#allocation7 + $0xd8] sm:$0xff]  ;;  %v168_v47 = vld [vmem:[#allocation7 + $0x50] sm:$0xff] }
  0x42   :  { %285 = vmatmul.mubr.msk.f32.vlgmr.msra.gmra.mrb[0].mxu0 %vm81_vm0, %v60_v27  ;;  %337 = vmatpush3.bf16.msra.mxu1 %v336_v26  ;;  %v348_v45 = vpack.c.bf16 %v167_v42, %v166_v41  ;;  %v350_v46 = vpack.c.bf16 %v185_v44, %v184_v43  ;;  %v169_v48 = vld [vmem:[#allocation7 + $0x58] sm:$0xff]  ;;  %v186_v49 = vld [vmem:[#allocation7 + $0xe0] sm:$0xff]  ;;  %v187_v50 = vld [vmem:[#allocation7 + $0xe8] sm:$0xff] }
  0x43   :  { %339 = vmatprep.subr.bf16.mxu1 %v338_v28  ;;  %v352_v51 = vpack.c.bf16 %v169_v48, %v168_v47  ;;  %v354_v52 = vpack.c.bf16 %v187_v50, %v186_v49  ;;  %v170_v53 = vld [vmem:[#allocation7 + $0x60] sm:$0xff]  ;;  %v171_v54 = vld [vmem:[#allocation7 + $0x68] sm:$0xff]  ;;  %v188_v56 = vld [vmem:[#allocation7 + $0xf0] sm:$0xff] }
  0x44   :  { %v356_v55 = vpack.c.bf16 %v171_v54, %v170_v53  ;;  %v189_v57 = vld [vmem:[#allocation7 + $0xf8] sm:$0xff]  ;;  %v172_v59 = vld [vmem:[#allocation7 + $0x70] sm:$0xff] }
  0x45   :  { %v358_v58 = vpack.c.bf16 %v189_v57, %v188_v56  ;;  %v173_v60 = vld [vmem:[#allocation7 + $0x78] sm:$0xff] }
  0x46   :  { %341 = vmatpush3.bf16.msra.mxu1 %v340_v33  ;;  %v360_v61 = vpack.c.bf16 %v173_v60, %v172_v59  ;;  %v69_v1 = vld [vmem:[%s560_s2] sm:$0x3]  ;;  %s275_s2 = sshll.u32 %s473_s9, 4  ;;  %s276_s2 = int_to_ptr.vmem [resolvable:$true] %s275_s2 }
  0x47   :  { %343 = vmatprep.subr.bf16.mxu1 %v342_v34  ;;  %v74_v3 = vrot.slane %v69_v1, %v73_v0  ;;  %v78_v4 = vrot.slane %v69_v1, %v77_v2  ;;  %v286_v12 = vld [vmem:[%s562_s4] ss:$0 sm:$0xff]  ;;  %s437_s10 = scalar_lea.vmem %s276_s2, 128  ;;  %p442_p11 = scmp.lt.s32.totalorder %s276_s2, %s276_s2 }
  0x48   :  { %p438_p10 = scmp.ne.s32.totalorder %s276_s2, %s437_s10  ;;  %p443_p12 = scmp.lt.s32.totalorder %s437_s10, %s437_s10 }
  0x4a   :  { %345 = vmatpush3.bf16.msra.mxu1 %v344_v39  ;;  %p444_p13 = por %p443_p12, %p442_p11 }
  0x4b   :  { %347 = vmatprep.subr.bf16.mxu1 %v346_v40 }
  0x4c   :  { %p445_p0 = pnand %p444_p13, %p438_p10 }
  0x4e   :  { %349 = vmatpush3.bf16.msra.mxu1 %v348_v45 }
  0x4f   :  { %351 = vmatprep.subr.bf16.mxu1 %v350_v46 }
  0x52   :  { %353 = vmatpush3.bf16.msra.mxu1 %v352_v51 }
  0x53   :  { %355 = vmatprep.subr.bf16.mxu1 %v354_v52 }
  0x56   :  { %357 = vmatpush3.bf16.msra.mxu1 %v356_v55 }
  0x57   :  { %359 = vmatprep.subr.bf16.mxu1 %v358_v58 }
  0x5a   :  { %361 = vmatpush3.bf16.msra.mxu1 %v360_v61 }
 0x115   :  { %v151_v5 = vpop.f32.mrb[0].mxu0 }
 0x116   :  { %v152_v6 = vadd.f32 %v151_v5, %v74_v3  ;;  %v153_v7 = vpop.f32.mrb[1].mxu0 }
 0x117   :  { %v154_v8 = vadd.f32 %v153_v7, %v78_v4 }
 0x118   :  { %v156_v10 = vmax.f32 %v152_v6, 0.0 }
 0x119   :  { %v157_v9 = vmax.f32 %v154_v8, 0.0 }
 0x11b   :  { %261 = vmatprep.mubr.f32.mxu1 %v157_v9 }
 0x11c   :  { %262 = vmatmul.mubr.f32.vlgmr.msra.gmra.mrb[0].mxu1 %v156_v10 }
 0x1ef   :  { %v319_v11 = vpop.f32.mrb[0].mxu1 }
 0x1f0   :  { %v320_v13 = vpop.f32.mrb[1].mxu1 }
 0x1f1   :  { %v321_v14 = vadd.f32 %v320_v13, %v319_v11 }
 0x1f3   :  { %v264_v15 = vadd.f32 %v321_v14, %v286_v12 }
 0x1f5   :  { %v267_v16 = vmax.f32 %v264_v15, 0.0 }
 0x1f7   :  { %268 = vst [vmem:[#allocation8] sm:$0xff] %v267_v16 }
 0x1f8   :  { %448 = shalt.err (!%p445_p0)
}
 0x1f9   :  { %s449_s13 = scalar_lea.hbm %s563_s5, 128 }
 0x1fa   :  { %p450_p1 = scmp.ne.s32.totalorder %s563_s5, %s449_s13  ;;  %p453_p2 = scmp.lt.u32.totalorder %s449_s13, %s563_s5 }
 0x1fc   :  { %p455_p3 = pnand %p453_p2, %p450_p1 }
 0x1fe   :  { %458 = shalt.err (!%p455_p3)
}
 0x1ff   :  { %278 = dma.vmem_to_hbm [thread:$0]  %s276_s2, 128, %s563_s5, [#allocation4]  }
 0x200   :  { %463 = dma.done.wait [#allocation4], 128  }
 0x201   :  { %464 = vsyncadd [#allocation4], 4294967168 }
 0x202   :  { %282 = vsyncpa [#allocation3], 1 }
 0x203   :  { %283 = vsyncpa [#allocation6], 1 }
 0x204   :  { %284 = vsyncpa [#allocation4], 1 }

</bundles_post_ra>
